<compile_context>
chip_gen: v5e
topology: v5e:2x2
jax: 0.10.0
libtpu: 0.0.40
codegen_flags: <defaults>
</compile_context>

<pallas_src>
import jax
import jax.numpy as jnp
from jax.experimental import pallas as pl
from jax.experimental.pallas import tpu as pltpu

EPS = 1e-5


# ----------------------------- Pallas kernel -------------------------------


def _decoder_mlp_kernel(x_ref, w1_ref, b1_ref, w2_ref, b2_ref, w3_ref, b3_ref,
                        out_ref):
    """linear1+bn1+relu -> linear2+bn2+relu -> linear3 -> tanh (lane-dense)."""
    x = x_ref[...].astype(jnp.bfloat16)                              # (bt, E)
    h = jnp.dot(x, w1_ref[...], preferred_element_type=jnp.float32) + b1_ref[...]
    h = jnp.maximum(h, 0.0)                                          # (bt, 256)
    h = jnp.dot(h.astype(jnp.bfloat16), w2_ref[...],
                preferred_element_type=jnp.float32) + b2_ref[...]
    h = jnp.maximum(h, 0.0)                                          # (bt, 64)
    y = jnp.dot(h.astype(jnp.bfloat16), w3_ref[...],
                preferred_element_type=jnp.float32) + b3_ref[...]    # (bt, 128*nc)
    out_ref[...] = jnp.tanh(y)


# ----------------------------- parameter setup -----------------------------


def init_params(key, encoder_feature_dim, num_child_node):
    ks = iter(jax.random.split(key, 16))

    def lin(fin, fout):
        w = jax.random.normal(next(ks), (fin, fout), jnp.float32) / jnp.sqrt(fin)
        b = 0.01 * jax.random.normal(next(ks), (fout,), jnp.float32)
        return w, b

    def bn(c):
        gamma = 1.0 + 0.1 * jax.random.normal(next(ks), (c,), jnp.float32)
        beta = 0.1 * jax.random.normal(next(ks), (c,), jnp.float32)
        rm = 0.05 * jax.random.normal(next(ks), (c,), jnp.float32)
        rv = 0.9 + 0.2 * jax.random.uniform(next(ks), (c,), jnp.float32)
        return gamma, beta, rm, rv

    p = {}
    p['W1'], p['b1'] = lin(encoder_feature_dim, 256)
    p['bn1'] = bn(256)
    p['W2'], p['b2'] = lin(256, 64)
    p['bn2'] = bn(64)
    p['W3'], p['b3'] = lin(64, 128 * num_child_node)
    return p


def fold_bn(w, b, bn_params):
    """Fold eval-mode BatchNorm1d into the preceding linear layer."""
    gamma, beta, rm, rv = bn_params
    s = gamma / jnp.sqrt(rv + EPS)
    return w * s[None, :], (b - rm) * s + beta


# ------------------------------- forward pass ------------------------------


def decoder_mlp_forward(feature, p, decoder_feature_dim, num_child_node):
    b, e = feature.shape
    # x.view(-1, decoder_feature_dim, num_child_node) on a (B, 128*nc) tensor
    # implies decoder_feature_dim == 128.
    assert decoder_feature_dim == 128, "module's view() requires dec_dim == 128"
    n_out = 128 * num_child_node

    # Fold eval-mode BatchNorm into the linears; cast weights to bf16
    # (accumulation stays f32 inside the kernel).
    w1e, b1e = fold_bn(p['W1'], p['b1'], p['bn1'])
    w2e, b2e = fold_bn(p['W2'], p['b2'], p['bn2'])
    w1b = w1e.astype(jnp.bfloat16)
    w2b = w2e.astype(jnp.bfloat16)
    w3b = p['W3'].astype(jnp.bfloat16)

    # Batch tiling: single tile for small batches, 256-row tiles otherwise.
    bt = b if b <= 256 else 256
    assert b % bt == 0 and (bt == b or bt % 8 == 0)

    y = pl.pallas_call(
        _decoder_mlp_kernel,
        out_shape=jax.ShapeDtypeStruct((b, n_out), jnp.float32),
        grid=(b // bt,),
        in_specs=[
            pl.BlockSpec((bt, e), lambda i: (i, 0)),        # feature tile
            pl.BlockSpec((e, 256), lambda i: (0, 0)),       # W1 (bn1 folded)
            pl.BlockSpec((1, 256), lambda i: (0, 0)),       # b1 (bn1 folded)
            pl.BlockSpec((256, 64), lambda i: (0, 0)),      # W2 (bn2 folded)
            pl.BlockSpec((1, 64), lambda i: (0, 0)),        # b2 (bn2 folded)
            pl.BlockSpec((64, n_out), lambda i: (0, 0)),    # W3
            pl.BlockSpec((1, n_out), lambda i: (0, 0)),     # b3
        ],
        out_specs=pl.BlockSpec((bt, n_out), lambda i: (i, 0)),
        compiler_params=pltpu.CompilerParams(
            dimension_semantics=("parallel",)),
    )(feature, w1b, b1e[None], w2b, b2e[None], w3b, p['b3'][None])

    # Layout glue (outside the kernel so the Pallas output stays lane-dense;
    # the module's final last dim is num_child_node, which is tiny/lane-sparse).
    x = y.reshape(b, decoder_feature_dim, num_child_node)
    feat_exp = jnp.broadcast_to(feature[:, :, None], (b, e, num_child_node))
    return jnp.concatenate([x, feat_exp], axis=1)


# --------------------------- plain-JAX reference ---------------------------


def reference_forward(feature, p, decoder_feature_dim, num_child_node):
    b, e = feature.shape
    hp = jax.lax.Precision.HIGHEST

    def bn(y, bnp):
        g, bt_, rm, rv = bnp
        return (y - rm) / jnp.sqrt(rv + EPS) * g + bt_

    h = jax.nn.relu(bn(jnp.dot(feature, p['W1'], precision=hp) + p['b1'], p['bn1']))
    h = jax.nn.relu(bn(jnp.dot(h, p['W2'], precision=hp) + p['b2'], p['bn2']))
    y = jnp.tanh(jnp.dot(h, p['W3'], precision=hp) + p['b3'])
    x = y.reshape(b, decoder_feature_dim, num_child_node)
    feat_exp = jnp.broadcast_to(feature[:, :, None], (b, e, num_child_node))
    return jnp.concatenate([x, feat_exp], axis=1)


# ----------------------------------- main -----------------------------------

if __name__ == "__main__":
    B = 2
    ENC_DIM = 256        # encoder_feature_dim
    DEC_DIM = 128        # decoder_feature_dim (forced to 128 by the view())
    NUM_CHILD = 4        # num_child_node

    key = jax.random.PRNGKey(0)
    kx, kp = jax.random.split(key)
    params = init_params(kp, ENC_DIM, NUM_CHILD)
    feature = jax.random.normal(kx, (B, ENC_DIM), jnp.float32)

    out = decoder_mlp_forward(feature, params, DEC_DIM, NUM_CHILD)
    jax.block_until_ready(out)

    ref = reference_forward(feature, params, DEC_DIM, NUM_CHILD)
    err = float(jnp.max(jnp.abs(out - ref)))
    assert out.shape == (B, DEC_DIM + ENC_DIM, NUM_CHILD), out.shape
    assert err < 5e-2, err   # bf16 matmul operands, f32 accumulation

    print("KERNEL_OK")
</pallas_src>

<mosaic_0001>
module attributes {stable_mosaic.version = 11 : i64} {
  func.func @_decoder_mlp_kernel(%arg0: i32, %arg1: memref<2x256xf32, #tpu.memory_space<vmem>>, %arg2: memref<256x256xbf16, #tpu.memory_space<vmem>>, %arg3: memref<1x256xf32, #tpu.memory_space<vmem>>, %arg4: memref<256x64xbf16, #tpu.memory_space<vmem>>, %arg5: memref<1x64xf32, #tpu.memory_space<vmem>>, %arg6: memref<64x512xbf16, #tpu.memory_space<vmem>>, %arg7: memref<1x512xf32, #tpu.memory_space<vmem>>, %arg8: memref<2x512xf32, #tpu.memory_space<vmem>>) attributes {dimension_semantics = [#tpu.dimension_semantics<parallel>], iteration_bounds = array<i64: 1>, scalar_prefetch = 0 : i64, scratch_operands = 0 : i64, tpu.core_type = #tpu.core_type<tc>, window_params = [{transform_indices = @transform_0, window_bounds = array<i64: 2, 256>}, {pipeline_mode = #tpu.pipeline_mode<synchronous>, transform_indices = @transform_1, window_bounds = array<i64: 256, 256>}, {pipeline_mode = #tpu.pipeline_mode<synchronous>, transform_indices = @transform_2, window_bounds = array<i64: 1, 256>}, {pipeline_mode = #tpu.pipeline_mode<synchronous>, transform_indices = @transform_3, window_bounds = array<i64: 256, 64>}, {pipeline_mode = #tpu.pipeline_mode<synchronous>, transform_indices = @transform_4, window_bounds = array<i64: 1, 64>}, {pipeline_mode = #tpu.pipeline_mode<synchronous>, transform_indices = @transform_5, window_bounds = array<i64: 64, 512>}, {pipeline_mode = #tpu.pipeline_mode<synchronous>, transform_indices = @transform_6, window_bounds = array<i64: 1, 512>}, {transform_indices = @transform_7, window_bounds = array<i64: 2, 512>}]} {
    %c0 = arith.constant 0 : index
    %c0_0 = arith.constant 0 : index
    %0 = vector.load %arg1[%c0, %c0_0] : memref<2x256xf32, #tpu.memory_space<vmem>>, vector<2x256xf32>
    %1 = arith.truncf %0 : vector<2x256xf32> to vector<2x256xbf16>
    %c0_1 = arith.constant 0 : index
    %c0_2 = arith.constant 0 : index
    %2 = vector.load %arg2[%c0_1, %c0_2] : memref<256x256xbf16, #tpu.memory_space<vmem>>, vector<256x256xbf16>
    %cst = arith.constant dense<0.000000e+00> : vector<2x256xf32>
    %3 = tpu.matmul %1, %2, %cst {dimension_numbers = #tpu.dot_dimension_numbers<[1], [0], [0], [1], [0, 0, 1, 1], [], []>} : vector<2x256xbf16>, vector<256x256xbf16>, vector<2x256xf32> -> vector<2x256xf32>
    %c0_3 = arith.constant 0 : index
    %c0_4 = arith.constant 0 : index
    %4 = vector.load %arg3[%c0_3, %c0_4] : memref<1x256xf32, #tpu.memory_space<vmem>>, vector<1x256xf32>
    %5 = vector.broadcast %4 : vector<1x256xf32> to vector<2x256xf32>
    %6 = arith.addf %3, %5 : vector<2x256xf32>
    %cst_5 = arith.constant 0.000000e+00 : f32
    %7 = vector.broadcast %cst_5 : f32 to vector<2x256xf32>
    %8 = arith.maximumf %6, %7 : vector<2x256xf32>
    %9 = arith.truncf %8 : vector<2x256xf32> to vector<2x256xbf16>
    %c0_6 = arith.constant 0 : index
    %c0_7 = arith.constant 0 : index
    %10 = vector.load %arg4[%c0_6, %c0_7] : memref<256x64xbf16, #tpu.memory_space<vmem>>, vector<256x64xbf16>
    %cst_8 = arith.constant dense<0.000000e+00> : vector<2x64xf32>
    %11 = tpu.matmul %9, %10, %cst_8 {dimension_numbers = #tpu.dot_dimension_numbers<[1], [0], [0], [1], [0, 0, 1, 1], [], []>} : vector<2x256xbf16>, vector<256x64xbf16>, vector<2x64xf32> -> vector<2x64xf32>
    %c0_9 = arith.constant 0 : index
    %c0_10 = arith.constant 0 : index
    %12 = vector.load %arg5[%c0_9, %c0_10] : memref<1x64xf32, #tpu.memory_space<vmem>>, vector<1x64xf32>
    %13 = vector.broadcast %12 : vector<1x64xf32> to vector<2x64xf32>
    %14 = arith.addf %11, %13 : vector<2x64xf32>
    %cst_11 = arith.constant 0.000000e+00 : f32
    %15 = vector.broadcast %cst_11 : f32 to vector<2x64xf32>
    %16 = arith.maximumf %14, %15 : vector<2x64xf32>
    %17 = arith.truncf %16 : vector<2x64xf32> to vector<2x64xbf16>
    %c0_12 = arith.constant 0 : index
    %c0_13 = arith.constant 0 : index
    %18 = vector.load %arg6[%c0_12, %c0_13] : memref<64x512xbf16, #tpu.memory_space<vmem>>, vector<64x512xbf16>
    %cst_14 = arith.constant dense<0.000000e+00> : vector<2x512xf32>
    %19 = tpu.matmul %17, %18, %cst_14 {dimension_numbers = #tpu.dot_dimension_numbers<[1], [0], [0], [1], [0, 0, 1, 1], [], []>} : vector<2x64xbf16>, vector<64x512xbf16>, vector<2x512xf32> -> vector<2x512xf32>
    %c0_15 = arith.constant 0 : index
    %c0_16 = arith.constant 0 : index
    %20 = vector.load %arg7[%c0_15, %c0_16] : memref<1x512xf32, #tpu.memory_space<vmem>>, vector<1x512xf32>
    %21 = vector.broadcast %20 : vector<1x512xf32> to vector<2x512xf32>
    %22 = arith.addf %19, %21 : vector<2x512xf32>
    %23 = math.tanh %22 : vector<2x512xf32>
    %c0_17 = arith.constant 0 : index
    %c0_18 = arith.constant 0 : index
    %24 = vector.load %arg8[%c0_17, %c0_18] : memref<2x512xf32, #tpu.memory_space<vmem>>, vector<2x512xf32>
    tpu.vector_store %arg8[%c0_17, %c0_18], %23 {strides = array<i32>} : memref<2x512xf32, #tpu.memory_space<vmem>>, vector<2x512xf32>,
    return
  }
  func.func @transform_0(%arg0: i32) -> (i32, i32) {
    %c0_i32 = arith.constant 0 : i32
    %c0_i32_0 = arith.constant 0 : i32
    return %arg0, %c0_i32 : i32, i32
  }
  func.func @transform_1(%arg0: i32) -> (i32, i32) {
    %c0_i32 = arith.constant 0 : i32
    %c0_i32_0 = arith.constant 0 : i32
    %c0_i32_1 = arith.constant 0 : i32
    return %c0_i32, %c0_i32_0 : i32, i32
  }
  func.func @transform_2(%arg0: i32) -> (i32, i32) {
    %c0_i32 = arith.constant 0 : i32
    %c0_i32_0 = arith.constant 0 : i32
    %c0_i32_1 = arith.constant 0 : i32
    return %c0_i32, %c0_i32_0 : i32, i32
  }
  func.func @transform_3(%arg0: i32) -> (i32, i32) {
    %c0_i32 = arith.constant 0 : i32
    %c0_i32_0 = arith.constant 0 : i32
    %c0_i32_1 = arith.constant 0 : i32
    return %c0_i32, %c0_i32_0 : i32, i32
  }
  func.func @transform_4(%arg0: i32) -> (i32, i32) {
    %c0_i32 = arith.constant 0 : i32
    %c0_i32_0 = arith.constant 0 : i32
    %c0_i32_1 = arith.constant 0 : i32
    return %c0_i32, %c0_i32_0 : i32, i32
  }
  func.func @transform_5(%arg0: i32) -> (i32, i32) {
    %c0_i32 = arith.constant 0 : i32
    %c0_i32_0 = arith.constant 0 : i32
    %c0_i32_1 = arith.constant 0 : i32
    return %c0_i32, %c0_i32_0 : i32, i32
  }
  func.func @transform_6(%arg0: i32) -> (i32, i32) {
    %c0_i32 = arith.constant 0 : i32
    %c0_i32_0 = arith.constant 0 : i32
    %c0_i32_1 = arith.constant 0 : i32
    return %c0_i32, %c0_i32_0 : i32, i32
  }
  func.func @transform_7(%arg0: i32) -> (i32, i32) {
    %c0_i32 = arith.constant 0 : i32
    %c0_i32_0 = arith.constant 0 : i32
    return %arg0, %c0_i32 : i32, i32
  }
}

</mosaic_0001>

<bundles_post_ra>
// kernel: tpu_custom_call.1
= control target key start
LH: loop header
LB: loop body
LE: loop exit
PB: predicated region body
PF: predicated region fallthrough
CT: control target
= control target key end

     0   :  { %12 = vsyncpa [#allocation3], 0  ;;  %s1260_s0 = inlined_call_operand.vmem [shape: f32[2,256], index: 0, kind: input, shape index: {}]   ;;  %s1261_s1 = inlined_call_operand.hbm [shape: bf16[256,256], index: 1, kind: input, shape index: {}]   ;;  %s1262_s2 = inlined_call_operand.vmem [shape: f32[1,256], index: 2, kind: input, shape index: {}]   ;;  %s1263_s3 = inlined_call_operand.vmem [shape: bf16[256,64], index: 3, kind: input, shape index: {}]   ;;  %s1264_s4 = inlined_call_operand.vmem [shape: f32[1,64], index: 4, kind: input, shape index: {}]   ;;  %s1265_s5 = inlined_call_operand.vmem [shape: bf16[64,512], index: 5, kind: input, shape index: {}]   ;;  %s1266_s6 = inlined_call_operand.vmem [shape: f32[1,512], index: 6, kind: input, shape index: {}]   ;;  %s1267_s7 = inlined_call_operand.hbm [shape: f32[2,512], index: 7, kind: output, shape index: {}]  }
   0x1   :  { %13 = vsyncpa [#allocation4], 0  ;;  %s20_s26 = sshll.u32 %s1261_s1, 4  ;;  %s1054_s27 = smov [#allocation2]   ;;  %s21_s26 = int_to_ptr.hbm [resolvable:$true] %s20_s26 }
   0x2   :  { %s22_s28 = sshll.u32 %s1054_s27, 4  ;;  %s1055_s29 = smov 128   ;;  %s23_s28 = int_to_ptr.vmem [resolvable:$true] %s22_s28 }
   0x3   :  { %s1056_s30 = smov 8  }
   0x4   :  { %28 = dma.hbm_to_vmem [thread:$0]  %s21_s26, 4096, %s23_s28, [#allocation3], %s1055_s29, %s1055_s29, %s1056_s30  }
   0x5   :  { %1050 = dma.done.wait [#allocation3], 4096  }
   0x6   :  { %1051 = vsyncadd [#allocation3], 4294963200  ;;  %v723_v0 = vld [vmem:[#allocation2 + $0x70] sm:$0xf]  ;;  %v940_v1 = vld [vmem:[#allocation2 + $0x74] sm:$0xf0] }
   0x7   :  { %v787_v2 = vld [vmem:[#allocation2 + $0xf0] sm:$0xf]  ;;  %v724_v3 = vor.u32 %v940_v1, %v723_v0  ;;  %v956_v4 = vld [vmem:[#allocation2 + $0xf4] sm:$0xf0]  ;;  %v939_v5 = vld [vmem:[#allocation2 + $0x74] sm:$0xf] }
   0x8   :  { %v725_v6 = vld [vmem:[#allocation2 + $0x78] sm:$0xf0]  ;;  %v788_v7 = vor.u32 %v956_v4, %v787_v2  ;;  %v955_v9 = vld [vmem:[#allocation2 + $0xf4] sm:$0xf]  ;;  %v715_v11 = vld [vmem:[#allocation2 + $0x60] sm:$0xf] }
   0x9   :  { %v728_v8 = vor.u32 %v939_v5, %v725_v6  ;;  %v789_v10 = vld [vmem:[#allocation2 + $0xf8] sm:$0xf0]  ;;  %251 = vmatpush.bf16.msra.mxu0 %v724_v3  ;;  %v938_v13 = vld [vmem:[#allocation2 + $0x64] sm:$0xf0]  ;;  %v779_v14 = vld [vmem:[#allocation2 + $0xe0] sm:$0xf] }
   0xa   :  { %v792_v12 = vor.u32 %v955_v9, %v789_v10  ;;  %v954_v15 = vld [vmem:[#allocation2 + $0xe4] sm:$0xf0]  ;;  %264 = vmatpush.bf16.msra.mxu1 %v788_v7  ;;  %v716_v16 = vor.u32 %v938_v13, %v715_v11  ;;  %v937_v18 = vld [vmem:[#allocation2 + $0x64] sm:$0xf]  ;;  %v717_v19 = vld [vmem:[#allocation2 + $0x68] sm:$0xf0] }
   0xb   :  { %277 = vmatpush.bf16.msra.mxu2 %v728_v8  ;;  %v780_v17 = vor.u32 %v954_v15, %v779_v14  ;;  %v953_v20 = vld [vmem:[#allocation2 + $0xe4] sm:$0xf]  ;;  %v720_v21 = vor.u32 %v937_v18, %v717_v19  ;;  %v781_v22 = vld [vmem:[#allocation2 + $0xe8] sm:$0xf0]  ;;  %v707_v23 = vld [vmem:[#allocation2 + $0x50] sm:$0xf] }
   0xc   :  { %290 = vmatpush.bf16.msra.mxu3 %v792_v12  ;;  %v936_v24 = vld [vmem:[#allocation2 + $0x54] sm:$0xf0]  ;;  %v784_v25 = vor.u32 %v953_v20, %v781_v22  ;;  %v771_v26 = vld [vmem:[#allocation2 + $0xd0] sm:$0xf]  ;;  %v935_v28 = vld [vmem:[#allocation2 + $0x54] sm:$0xf] }
   0xd   :  { %v952_v27 = vld [vmem:[#allocation2 + $0xd4] sm:$0xf0]  ;;  %252 = vmatpush.bf16.msra.mxu0 %v716_v16  ;;  %v708_v29 = vor.u32 %v936_v24, %v707_v23  ;;  %v709_v30 = vld [vmem:[#allocation2 + $0x58] sm:$0xf0]  ;;  %v951_v31 = vld [vmem:[#allocation2 + $0xd4] sm:$0xf] }
   0xe   :  { %v773_v32 = vld [vmem:[#allocation2 + $0xd8] sm:$0xf0]  ;;  %265 = vmatpush.bf16.msra.mxu1 %v780_v17  ;;  %v772_v33 = vor.u32 %v952_v27, %v771_v26  ;;  %v712_v34 = vor.u32 %v935_v28, %v709_v30  ;;  %v699_v35 = vld [vmem:[#allocation2 + $0x40] sm:$0xf]  ;;  %v934_v36 = vld [vmem:[#allocation2 + $0x44] sm:$0xf0] }
   0xf   :  { %278 = vmatpush.bf16.msra.mxu2 %v720_v21  ;;  %v763_v37 = vld [vmem:[#allocation2 + $0xc0] sm:$0xf]  ;;  %v776_v38 = vor.u32 %v951_v31, %v773_v32  ;;  %v950_v39 = vld [vmem:[#allocation2 + $0xc4] sm:$0xf0]  ;;  %v933_v40 = vld [vmem:[#allocation2 + $0x44] sm:$0xf]  ;;  %v700_v44 = vor.u32 %v934_v36, %v699_v35 }
  0x10   :  { %291 = vmatpush.bf16.msra.mxu3 %v784_v25  ;;  %v701_v41 = vld [vmem:[#allocation2 + $0x48] sm:$0xf0]  ;;  %v949_v42 = vld [vmem:[#allocation2 + $0xc4] sm:$0xf]  ;;  %v764_v45 = vor.u32 %v950_v39, %v763_v37  ;;  %v691_v47 = vld [vmem:[#allocation2 + $0x30] sm:$0xf] }
  0x11   :  { %v765_v43 = vld [vmem:[#allocation2 + $0xc8] sm:$0xf0]  ;;  %253 = vmatpush.bf16.msra.mxu0 %v708_v29  ;;  %v704_v46 = vor.u32 %v933_v40, %v701_v41  ;;  %v932_v48 = vld [vmem:[#allocation2 + $0x34] sm:$0xf0]  ;;  %v755_v49 = vld [vmem:[#allocation2 + $0xb0] sm:$0xf] }
  0x12   :  { %266 = vmatpush.bf16.msra.mxu1 %v772_v33  ;;  %v768_v50 = vor.u32 %v949_v42, %v765_v43  ;;  %v948_v51 = vld [vmem:[#allocation2 + $0xb4] sm:$0xf0]  ;;  %v931_v52 = vld [vmem:[#allocation2 + $0x34] sm:$0xf]  ;;  %v693_v53 = vld [vmem:[#allocation2 + $0x38] sm:$0xf0]  ;;  %v692_v56 = vor.u32 %v932_v48, %v691_v47 }
  0x13   :  { %279 = vmatpush.bf16.msra.mxu2 %v712_v34  ;;  %v947_v54 = vld [vmem:[#allocation2 + $0xb4] sm:$0xf]  ;;  %v757_v55 = vld [vmem:[#allocation2 + $0xb8] sm:$0xf0]  ;;  %v756_v57 = vor.u32 %v948_v51, %v755_v49  ;;  %v696_v58 = vor.u32 %v931_v52, %v693_v53  ;;  %v683_v59 = vld [vmem:[#allocation2 + $0x20] sm:$0xf] }
  0x14   :  { %292 = vmatpush.bf16.msra.mxu3 %v776_v38  ;;  %v930_v60 = vld [vmem:[#allocation2 + $0x24] sm:$0xf0]  ;;  %v747_v61 = vld [vmem:[#allocation2 + $0xa0] sm:$0xf]  ;;  %v760_v62 = vor.u32 %v947_v54, %v757_v55  ;;  %v929_v0 = vld [vmem:[#allocation2 + $0x24] sm:$0xf] }
  0x15   :  { %254 = vmatpush.bf16.msra.mxu0 %v700_v44  ;;  %v946_v63 = vld [vmem:[#allocation2 + $0xa4] sm:$0xf0]  ;;  %v685_v1 = vld [vmem:[#allocation2 + $0x28] sm:$0xf0]  ;;  %v945_v2 = vld [vmem:[#allocation2 + $0xa4] sm:$0xf]  ;;  %v684_v4 = vor.u32 %v930_v60, %v683_v59 }
  0x16   :  { %267 = vmatpush.bf16.msra.mxu1 %v764_v45  ;;  %v749_v3 = vld [vmem:[#allocation2 + $0xa8] sm:$0xf0]  ;;  %v675_v5 = vld [vmem:[#allocation2 + $0x10] sm:$0xf]  ;;  %v748_v6 = vor.u32 %v946_v63, %v747_v61  ;;  %v688_v7 = vor.u32 %v929_v0, %v685_v1  ;;  %v928_v8 = vld [vmem:[#allocation2 + $0x14] sm:$0xf0] }
  0x17   :  { %280 = vmatpush.bf16.msra.mxu2 %v704_v46  ;;  %v739_v9 = vld [vmem:[#allocation2 + $0x90] sm:$0xf]  ;;  %v944_v10 = vld [vmem:[#allocation2 + $0x94] sm:$0xf0]  ;;  %v752_v11 = vor.u32 %v945_v2, %v749_v3  ;;  %v927_v12 = vld [vmem:[#allocation2 + $0x14] sm:$0xf]  ;;  %v676_v17 = vor.u32 %v928_v8, %v675_v5 }
  0x18   :  { %293 = vmatpush.bf16.msra.mxu3 %v768_v50  ;;  %v677_v13 = vld [vmem:[#allocation2 + $0x18] sm:$0xf0]  ;;  %v44_v14 = vld [vmem:[%s1260_s0] sm:$0xf]  ;;  %v943_v15 = vld [vmem:[#allocation2 + $0x94] sm:$0xf]  ;;  %v740_v19 = vor.u32 %v944_v10, %v739_v9 }
  0x19   :  { %255 = vmatpush.bf16.msra.mxu0 %v692_v56  ;;  %v741_v16 = vld [vmem:[#allocation2 + $0x98] sm:$0xf0]  ;;  %46 = vst [vmem:[#allocation1] ss:$4 sm:$0xff] %v44_v14  ;;  %v667_v18 = vld [vmem:[#allocation2] sm:$0xf]  ;;  %v680_v20 = vor.u32 %v927_v12, %v677_v13 }
  0x1a   :  { %268 = vmatpush.bf16.msra.mxu1 %v756_v57  ;;  %v926_v21 = vld [vmem:[#allocation2 + $0x4] sm:$0xf0]  ;;  %v731_v22 = vld [vmem:[#allocation2 + $0x80] sm:$0xf]  ;;  %v744_v24 = vor.u32 %v943_v15, %v741_v16  ;;  %v925_v25 = vld [vmem:[#allocation2 + $0x4] sm:$0xf] }
  0x1b   :  { %281 = vmatpush.bf16.msra.mxu2 %v696_v58  ;;  %v942_v23 = vld [vmem:[#allocation2 + $0x84] sm:$0xf0]  ;;  %v669_v26 = vld [vmem:[#allocation2 + $0x8] sm:$0xf0]  ;;  %v941_v27 = vld [vmem:[#allocation2 + $0x84] sm:$0xf]  ;;  %v668_v29 = vor.u32 %v926_v21, %v667_v18 }
  0x1c   :  { %294 = vmatpush.bf16.msra.mxu3 %v760_v62  ;;  %v733_v28 = vld [vmem:[#allocation2 + $0x88] sm:$0xf0]  ;;  %v732_v30 = vor.u32 %v942_v23, %v731_v22  ;;  %v672_v31 = vor.u32 %v925_v25, %v669_v26  ;;  %v964_v32 = vld [vmem:[%s1263_s3 + $0x38] sm:$0xff]  ;;  %v962_v41 = vld [vmem:[%s1263_s3 + $0x28] sm:$0xff]  ;;  %vm573_vm0 = vcmask 523264   ;;  %vm640_vm1 = vcmask 1041408  }
  0x1d   :  { %256 = vmatpush.bf16.msra.mxu0 %v684_v4  ;;  %v736_v33 = vor.u32 %v941_v27, %v733_v28  ;;  %v972_v37 = vld [vmem:[%s1263_s3 + $0x78] sm:$0xff]  ;;  %v963_v39 = vld [vmem:[%s1263_s3 + $0x30] sm:$0xff]  ;;  %v970_v42 = vld [vmem:[%s1263_s3 + $0x68] sm:$0xff]  ;;  %vm642_vm2 = vcmask 1045508   ;;  %s655_s30 = sshll.u32 %s1267_s7, 4  ;;  %vm644_vm3 = vcmask 1043456   ;;  %s656_s30 = int_to_ptr.hbm [resolvable:$true] %s655_s30 }
  0x1e   :  { %269 = vmatpush.bf16.msra.mxu1 %v748_v6  ;;  %v971_v40 = vld [vmem:[%s1263_s3 + $0x70] sm:$0xff]  ;;  %v961_v43 = vld [vmem:[%s1263_s3 + $0x20] sm:$0xff]  ;;  %v960_v45 = vld [vmem:[%s1263_s3 + $0x18] sm:$0xff] }
  0x1f   :  { %282 = vmatpush.bf16.msra.mxu2 %v688_v7  ;;  %v969_v44 = vld [vmem:[%s1263_s3 + $0x60] sm:$0xff]  ;;  %v959_v46 = vld [vmem:[%s1263_s3 + $0x10] sm:$0xff]  ;;  %v968_v47 = vld [vmem:[%s1263_s3 + $0x58] sm:$0xff] }
  0x20   :  { %295 = vmatpush.bf16.msra.mxu3 %v752_v11  ;;  %v47_v34 = vld.sshfl [vmem:[#allocation1] sm:$0xff pattern:$0x73625140]  ;;  %v48_v35 = vld.sshfl [vmem:[#allocation1 + $0x8] sm:$0xff pattern:$0x73625140] }
  0x21   :  { %257 = vmatpush.bf16.msra.mxu0 %v676_v17  ;;  %v51_v36 = vpack.c.bf16 %v47_v34, %v47_v34  ;;  %v52_v38 = vpack.c.bf16 %v48_v35, %v48_v35  ;;  %v958_v48 = vld [vmem:[%s1263_s3 + $0x8] sm:$0xff]  ;;  %v967_v49 = vld [vmem:[%s1263_s3 + $0x50] sm:$0xff]  ;;  %v957_v50 = vld [vmem:[%s1263_s3] sm:$0xff] }
  0x22   :  { %270 = vmatpush.bf16.msra.mxu1 %v740_v19  ;;  %v966_v51 = vld [vmem:[%s1263_s3 + $0x48] sm:$0xff]  ;;  %v965_v52 = vld [vmem:[%s1263_s3 + $0x40] sm:$0xff]  ;;  %v987_v54 = vld [vmem:[%s1265_s5 + $0x6c] sm:$0xf0] }
  0x23   :  { %283 = vmatpush.bf16.msra.mxu2 %v680_v20  ;;  %v907_v53 = vld [vmem:[%s1265_s5 + $0x60] sm:$0xf]  ;;  %v985_v55 = vld [vmem:[%s1265_s5 + $0x64] sm:$0xf]  ;;  %v909_v57 = vld [vmem:[%s1265_s5 + $0x70] sm:$0xf0] }
  0x24   :  { %296 = vmatpush.bf16.msra.mxu3 %v744_v24  ;;  %v908_v56 = vor.u32 %v987_v54, %v907_v53  ;;  %v912_v58 = vor.u32 %v985_v55, %v909_v57  ;;  %v85_v59 = vld [vmem:[%s1262_s2] sm:$0x3]  ;;  %v983_v15 = vld [vmem:[%s1265_s5 + $0x4c] sm:$0xf0]  ;;  %v981_v16 = vld [vmem:[%s1265_s5 + $0x44] sm:$0xf] }
  0x25   :  { %258 = vmatpush.bf16.msra.mxu0 %v668_v29  ;;  %v87_v60 = vperm.slane %v85_v59, 0  ;;  %v88_v1 = vperm.slane %v85_v59, 1  ;;  %v891_v14 = vld [vmem:[%s1265_s5 + $0x40] sm:$0xf]  ;;  %v893_v18 = vld [vmem:[%s1265_s5 + $0x50] sm:$0xf0] }
  0x26   :  { %271 = vmatpush.bf16.msra.mxu1 %v732_v30  ;;  %v892_v17 = vor.u32 %v983_v15, %v891_v14  ;;  %v875_v19 = vld [vmem:[%s1265_s5 + $0x20] sm:$0xf]  ;;  %v979_v20 = vld [vmem:[%s1265_s5 + $0x2c] sm:$0xf0]  ;;  %v896_v21 = vor.u32 %v981_v16, %v893_v18  ;;  %v977_v22 = vld [vmem:[%s1265_s5 + $0x24] sm:$0xf] }
  0x27   :  { %284 = vmatpush.bf16.msra.mxu2 %v672_v31  ;;  %v877_v23 = vld [vmem:[%s1265_s5 + $0x30] sm:$0xf0]  ;;  %v876_v24 = vor.u32 %v979_v20, %v875_v19  ;;  %v859_v26 = vld [vmem:[%s1265_s5] sm:$0xf]  ;;  %v975_v27 = vld [vmem:[%s1265_s5 + $0xc] sm:$0xf0] }
  0x28   :  { %297 = vmatpush.bf16.msra.mxu3 %v736_v33  ;;  %259 = vmatmul.bf16.vlgmr.msra.gmra.mxu0 %v51_v36  ;;  %v880_v25 = vor.u32 %v977_v22, %v877_v23  ;;  %v973_v28 = vld [vmem:[%s1265_s5 + $0x4] sm:$0xf]  ;;  %v860_v29 = vor.u32 %v975_v27, %v859_v26  ;;  %v861_v30 = vld [vmem:[%s1265_s5 + $0x10] sm:$0xf0]  ;;  %v988_v33 = vld [vmem:[%s1265_s5 + $0x74] sm:$0xf0] }
  0x29   :  { %439 = vmatpush.bf16.msrb.mxu0 %v964_v32  ;;  %272 = vmatmul.bf16.vlgmr.msra.gmra.mxu1 %v52_v38  ;;  %v864_v31 = vor.u32 %v973_v28, %v861_v30  ;;  %v915_v32 = vld [vmem:[%s1265_s5 + $0x68] sm:$0xf]  ;;  %v986_v34 = vld [vmem:[%s1265_s5 + $0x6c] sm:$0xf]  ;;  %v869_v53 = vld [vmem:[%s1265_s5 + $0x18] sm:$0xf0] }
  0x2a   :  { %452 = vmatpush.bf16.msrb.mxu1 %v972_v37  ;;  %285 = vmatmul.bf16.vlgmr.msra.gmra.mxu2 %v51_v36  ;;  %v916_v35 = vor.u32 %v988_v33, %v915_v32  ;;  %v917_v36 = vld [vmem:[%s1265_s5 + $0x78] sm:$0xf0] }
  0x2b   :  { %298 = vmatmul.bf16.vlgmr.msra.gmra.mxu3 %v52_v38  ;;  %581 = vmatpush.bf16.msrb.mxu2 %v908_v56  ;;  %v920_v37 = vor.u32 %v986_v34, %v917_v36  ;;  %v899_v38 = vld [vmem:[%s1265_s5 + $0x48] sm:$0xf]  ;;  %v993_v56 = vld [vmem:[%s1264_s4] ss:$0 sm:$0xff]  ;;  %s1057_s4 = smov [#allocation5]  }
  0x2c   :  { %594 = vmatpush.bf16.msrb.mxu3 %v912_v58 }
  0x2d   :  { %440 = vmatpush.bf16.msrb.mxu0 %v963_v39  ;;  %v984_v39 = vld [vmem:[%s1265_s5 + $0x54] sm:$0xf0] }
  0x2e   :  { %453 = vmatpush.bf16.msrb.mxu1 %v971_v40  ;;  %v982_v40 = vld [vmem:[%s1265_s5 + $0x4c] sm:$0xf] }
  0x2f   :  { %582 = vmatpush.bf16.msrb.mxu2 %v892_v17 }
  0x30   :  { %595 = vmatpush.bf16.msrb.mxu3 %v896_v21 }
  0x31   :  { %441 = vmatpush.bf16.msrb.mxu0 %v962_v41  ;;  %v900_v41 = vor.u32 %v984_v39, %v899_v38 }
  0x32   :  { %454 = vmatpush.bf16.msrb.mxu1 %v970_v42  ;;  %v901_v42 = vld [vmem:[%s1265_s5 + $0x58] sm:$0xf0] }
  0x33   :  { %583 = vmatpush.bf16.msrb.mxu2 %v876_v24 }
  0x34   :  { %596 = vmatpush.bf16.msrb.mxu3 %v880_v25 }
  0x35   :  { %442 = vmatpush.bf16.msrb.mxu0 %v961_v43  ;;  %v904_v43 = vor.u32 %v982_v40, %v901_v42 }
  0x36   :  { %455 = vmatpush.bf16.msrb.mxu1 %v969_v44  ;;  %v883_v44 = vld [vmem:[%s1265_s5 + $0x28] sm:$0xf] }
  0x37   :  { %584 = vmatpush.bf16.msrb.mxu2 %v860_v29 }
  0x38   :  { %597 = vmatpush.bf16.msrb.mxu3 %v864_v31 }
  0x39   :  { %443 = vmatpush.bf16.msrb.mxu0 %v960_v45  ;;  %v980_v45 = vld [vmem:[%s1265_s5 + $0x34] sm:$0xf0] }
  0x3a   :  { %456 = vmatpush.bf16.msrb.mxu1 %v968_v47  ;;  %v885_v47 = vld [vmem:[%s1265_s5 + $0x38] sm:$0xf0] }
  0x3b   :  { %607 = vmatpush.bf16.msra.mxu2 %v916_v35 }
  0x3c   :  { %620 = vmatpush.bf16.msra.mxu3 %v920_v37 }
  0x3d   :  { %444 = vmatpush.bf16.msrb.mxu0 %v959_v46  ;;  %v978_v46 = vld [vmem:[%s1265_s5 + $0x2c] sm:$0xf] }
  0x3e   :  { %457 = vmatpush.bf16.msrb.mxu1 %v967_v49  ;;  %v888_v49 = vor.u32 %v978_v46, %v885_v47 }
  0x3f   :  { %608 = vmatpush.bf16.msra.mxu2 %v900_v41 }
  0x40   :  { %621 = vmatpush.bf16.msra.mxu3 %v904_v43 }
  0x41   :  { %445 = vmatpush.bf16.msrb.mxu0 %v958_v48  ;;  %v884_v48 = vor.u32 %v980_v45, %v883_v44 }
  0x42   :  { %458 = vmatpush.bf16.msrb.mxu1 %v966_v51  ;;  %v976_v51 = vld [vmem:[%s1265_s5 + $0x14] sm:$0xf0] }
  0x43   :  { %609 = vmatpush.bf16.msra.mxu2 %v884_v48 }
  0x44   :  { %622 = vmatpush.bf16.msra.mxu3 %v888_v49 }
  0x45   :  { %446 = vmatpush.bf16.msrb.mxu0 %v957_v50  ;;  %v867_v50 = vld [vmem:[%s1265_s5 + $0x8] sm:$0xf] }
  0x46   :  { %459 = vmatpush.bf16.msrb.mxu1 %v965_v52  ;;  %v974_v52 = vld [vmem:[%s1265_s5 + $0xc] sm:$0xf]  ;;  %v868_v54 = vor.u32 %v976_v51, %v867_v50 }
  0x47   :  { %v872_v55 = vor.u32 %v974_v52, %v869_v53 }
  0x48   :  { %610 = vmatpush.bf16.msra.mxu2 %v868_v54 }
  0x49   :  { %623 = vmatpush.bf16.msra.mxu3 %v872_v55 }
  0xa5   :  { %v260_v61 = vpop.f32.mrf.mxu0 }
  0xa6   :  { %v261_v62 = vadd.f32 %v260_v61, %v87_v60  ;;  %v273_v63 = vpop.f32.mrf.mxu1 }
  0xa8   :  { %v274_v0 = vadd.f32 %v273_v63, %v261_v62 }
  0xaa   :  { %v303_v2 = vmax.f32 %v274_v0, 0.0 }
  0xac   :  { %v305_v3 = vpack.c.bf16 %v303_v2, %v303_v2 }
  0xad   :  { %v286_v4 = vpop.f32.mrf.mxu2  ;;  %v262_v7 = vpop.f32.mrf.mxu0 }
  0xae   :  { %v287_v5 = vadd.f32 %v286_v4, %v88_v1  ;;  %v299_v6 = vpop.f32.mrf.mxu3  ;;  %v275_v8 = vpop.f32.mrf.mxu1  ;;  %447 = vmatmul.bf16.vlgmr.msrb.gmra.mxu0 %v305_v3  ;;  %v483_v3 = vld [vmem:[%s1266_s6] sm:$0xf]  ;;  %s653_s6 = sshll.u32 %s1057_s4, 4  ;;  %s654_s6 = int_to_ptr.vmem [resolvable:$true] %s653_s6 }
  0xaf   :  { %v486_v4 = vperm.slane %v483_v3, 1  ;;  %v487_v8 = vperm.slane %v483_v3, 2 }
  0xb0   :  { %v300_v9 = vadd.f32 %v299_v6, %v287_v5 }
  0xb2   :  { %v304_v10 = vmax.f32 %v300_v9, 0.0  ;;  %v488_v9 = vperm.slane %v483_v3, 3 }
  0xb4   :  { %v306_v11 = vpack.c.bf16 %v304_v10, %v304_v10  ;;  %v485_v10 = vperm.slane %v483_v3, 0 }
  0xb5   :  { %v288_v12 = vpop.f32.mrf.mxu2 }
  0xb6   :  { %v301_v13 = vpop.f32.mrf.mxu3  ;;  %460 = vmatmul.bf16.vlgmr.msrb.gmra.mxu1 %v306_v11 }
 0x12b   :  { %v448_v57 = vpop.f32.mrf.mxu0 }
 0x12c   :  { %v449_v58 = vadd.f32 %v993_v56, %v448_v57 }
 0x133   :  { %v461_v59 = vpop.f32.mrf.mxu1  ;;  %v450_v61 = vpop.f32.mrf.mxu0 }
 0x134   :  { %v462_v60 = vadd.f32 %v461_v59, %v449_v58 }
 0x136   :  { %v465_v62 = vmax.f32 %v462_v60, 0.0 }
 0x138   :  { %v466_v63 = vpack.c.bf16 %v465_v62, %v465_v62 }
 0x13a   :  { %921 = vmatmul.msk.bf16.vlgmr.msrb.gmra.mxu2 %vm573_vm0, %v466_v63  ;;  %922 = vmatmul.msk.bf16.vlgmr.msrb.gmra.mxu3 %vm573_vm0, %v466_v63 }
 0x13b   :  { %v463_v0 = vpop.f32.mrf.mxu1 }
 0x14a   :  { %923 = vmatmul.msk.bf16.vlgmr.msra.gmra.mxu2 %vm573_vm0, %v466_v63  ;;  %924 = vmatmul.msk.bf16.vlgmr.msra.gmra.mxu3 %vm573_vm0, %v466_v63 }
 0x1bd   :  { %v586_v1 = vpop.f32.mrf.mxu2  ;;  %v599_v2 = vpop.f32.mrf.mxu3 }
 0x1be   :  { %v600_v7 = vadd.f32 %v599_v2, %v486_v4  ;;  %v587_v15 = vadd.f32 %v586_v1, %v485_v10 }
 0x1c0   :  { %994 = vtanh.f32 %v600_v7 }
 0x1c5   :  { %v588_v5 = vpop.f32.mrf.mxu2  ;;  %v601_v6 = vpop.f32.mrf.mxu3 }
 0x1c6   :  { %v995_v16 = vpop.eup %994 }
 0x1c7   :  { %v637_v20 = vrot.slane %v995_v16, 6 }
 0x1cd   :  { %v612_v11 = vpop.f32.mrf.mxu2  ;;  %v625_v12 = vpop.f32.mrf.mxu3 }
 0x1ce   :  { %v613_v13 = vadd.f32 %v612_v11, %v487_v8  ;;  %v626_v14 = vadd.f32 %v625_v12, %v488_v9 }
 0x1d0   :  { %996 = vtanh.f32 %v613_v13 }
 0x1d1   :  { %998 = vtanh.f32 %v626_v14 }
 0x1d2   :  { %1000 = vtanh.f32 %v587_v15 }
 0x1d5   :  { %v614_v17 = vpop.f32.mrf.mxu2  ;;  %v627_v18 = vpop.f32.mrf.mxu3 }
 0x1d6   :  { %v997_v19 = vpop.eup %996 }
 0x1d7   :  { %v999_v21 = vpop.eup %998  ;;  %v638_v22 = vrot.slane %v997_v19, 4 }
 0x1d8   :  { %v639_v23 = vrot.slane %v999_v21, 2  ;;  %v1001_v24 = vpop.eup %1000 }
 0x1d9   :  { %v641_v25 = vsel %vm640_vm1, %v1001_v24, %v637_v20 }
 0x1da   :  { %v643_v26 = vsel %vm642_vm2, %v638_v22, %v639_v23 }
 0x1db   :  { %v645_v27 = vsel %vm644_vm3, %v641_v25, %v643_v26 }
 0x1dc   :  { %647 = vst [vmem:[#allocation5] sm:$0xff] %v645_v27 }
 0x1dd   :  { %658 = dma.vmem_to_hbm [thread:$0]  %s654_s6, 128, %s656_s30, [#allocation4]  }
 0x1de   :  { %1052 = dma.done.wait [#allocation4], 128  }
 0x1df   :  { %1053 = vsyncadd [#allocation4], 4294967168 }
 0x1e0   :  { %663 = vsyncpa [#allocation3], 1 }
 0x1e1   :  { %664 = vsyncpa [#allocation4], 1 }

</bundles_post_ra>
